<compile_context>
chip_gen: v7x
topology: tpu7x:2x2x1
jax: 0.10.0
libtpu: 0.0.40
codegen_flags: <defaults>
</compile_context>

<pallas_src>
import functools

import jax
import jax.numpy as jnp
from jax.experimental import pallas as pl
from jax.experimental.pallas import tpu as pltpu

IN_FEATURES = 8
OUT_FEATURES = 2
GROUP = 16                          # samples folded into one 128-lane row (16*8)
LANES = GROUP * IN_FEATURES         # 128
OUT_LANES = GROUP * OUT_FEATURES    # 32


def _dirichlet_extractor_kernel(x_ref, w_ref, b_ref, o_ref):
    # x_ref: (T, 128) VMEM tile -- 16 interleaved samples per row, lane-dense.
    # w_ref: (128, 32) VMEM  = kron(I_16, W^T)   (block-diagonal folded weight).
    # b_ref: (1, 32)   VMEM  = tile(bias, 16).
    # o_ref: (T, 32)   VMEM  -- row-major (sample, out) order == free (B, 2) view.
    x = x_ref[...].astype(jnp.float32)              # in-kernel upcast, hidden under DMA
    z = jnp.dot(x, w_ref[...], preferred_element_type=jnp.float32) + b_ref[...]
    # Numerically-stable softplus: max(z, 0) + log1p(exp(-|z|))   (EUP-slot ops).
    sp = jnp.maximum(z, 0.0) + jnp.log1p(jnp.exp(-jnp.abs(z)))
    o_ref[...] = sp.astype(o_ref.dtype)


@functools.partial(jax.jit, static_argnames=("tb",))
def dirichlet_extractor(latent: jax.Array, weight: jax.Array, bias: jax.Array,
                        *, tb: int = 65536) -> jax.Array:
    """latent: (B, 8); weight: (2, 8) (PyTorch layout); bias: (2,). Returns (B, 2)."""
    B = latent.shape[0]
    out_dtype = latent.dtype

    # (B, 8) -> (B/16, 128) is a free row-major reshape (no transpose, no copy).
    # Pad only when B isn't a multiple of 16; padded samples see x = 0 and the
    # resulting softplus(bias) rows are sliced off before returning.
    b16 = pl.cdiv(B, GROUP) * GROUP
    x = latent if b16 == B else jnp.pad(latent, ((0, b16 - B), (0, 0)))
    rows = b16 // GROUP
    x2d = x.reshape(rows, LANES)

    # Fold the (2, 8) linear weight into a (128, 32) block-diagonal matrix so the
    # interleaved 16-sample lane layout maps straight onto row-major (B, 2).
    w_big = jnp.kron(jnp.eye(GROUP, dtype=jnp.float32),
                     weight.astype(jnp.float32).T)                # (128, 32)
    b_big = jnp.tile(bias.astype(jnp.float32), GROUP).reshape(1, OUT_LANES)

    # Rows per grid step: big tiles amortize the ~0.35 us/step overhead, but keep
    # >= 2 steps so v7x megacore can split the batch; always a multiple of 8
    # sublanes (or the full row count for tiny batches).
    tb = max(128, (tb // 128) * 128)               # samples per tile, mult. of 128
    cap_rows = tb // GROUP                         # multiple of 8
    half_rows = pl.cdiv(pl.cdiv(rows, 2), 8) * 8   # ~half the rows, rounded up to 8
    t_rows = max(8, min(cap_rows, half_rows))
    if t_rows >= rows:
        t_rows = rows                              # single block covers everything

    grid = (pl.cdiv(rows, t_rows),)                # ragged last block handled by Pallas

    out2d = pl.pallas_call(
        _dirichlet_extractor_kernel,
        out_shape=jax.ShapeDtypeStruct((rows, OUT_LANES), out_dtype),
        grid=grid,
        in_specs=[
            pl.BlockSpec((t_rows, LANES), lambda i: (i, 0)),        # activations
            pl.BlockSpec((LANES, OUT_LANES), lambda i: (0, 0)),     # folded weight (resident)
            pl.BlockSpec((1, OUT_LANES), lambda i: (0, 0)),         # folded bias (resident)
        ],
        out_specs=pl.BlockSpec((t_rows, OUT_LANES), lambda i: (i, 0)),
        compiler_params=pltpu.CompilerParams(
            dimension_semantics=("parallel",)),
        cost_estimate=pl.CostEstimate(
            flops=2 * b16 * IN_FEATURES * OUT_FEATURES,
            transcendentals=2 * b16 * OUT_FEATURES,
            bytes_accessed=b16 * (IN_FEATURES * x2d.dtype.itemsize
                                  + OUT_FEATURES * jnp.dtype(out_dtype).itemsize),
        ),
    )(x2d, w_big, b_big)

    out = out2d.reshape(b16, OUT_FEATURES)         # free row-major reshape
    return out if b16 == B else out[:B]


def _reference(latent, weight, bias):
    return jnp.logaddexp(latent @ weight.T + bias, 0.0)   # softplus


if __name__ == "__main__":
    key = jax.random.PRNGKey(0)
    k_w, k_b, k_x1, k_x2 = jax.random.split(key, 4)

    def _bf16_grid(a):
        # Snap test data to the bf16 grid so the correctness check is insensitive
        # to the MXU's f32-matmul pass count; layout/index bugs still produce
        # wildly wrong values and would be caught.
        return a.astype(jnp.bfloat16).astype(jnp.float32)

    # Deterministic nn.Linear-style init: U(-1/sqrt(fan_in), 1/sqrt(fan_in)).
    bound = 1.0 / float(IN_FEATURES) ** 0.5
    weight = _bf16_grid(jax.random.uniform(
        k_w, (OUT_FEATURES, IN_FEATURES), jnp.float32, -bound, bound))
    bias = _bf16_grid(jax.random.uniform(
        k_b, (OUT_FEATURES,), jnp.float32, -bound, bound))

    # Aligned small batch (multiple of 16): pure free-reshape path, 2-step grid.
    B1 = 256
    latent1 = _bf16_grid(jax.random.normal(k_x1, (B1, IN_FEATURES), jnp.float32))
    out1 = jax.block_until_ready(dirichlet_extractor(latent1, weight, bias))
    assert out1.shape == (B1, OUT_FEATURES)
    assert jnp.allclose(out1, _reference(latent1, weight, bias), atol=1e-5, rtol=1e-5)

    # Ragged batch (not a multiple of 16) with a tiny tile: exercises the
    # pad-to-16 path, a 3-step grid, and the masked partial last block.
    B2 = 300
    latent2 = _bf16_grid(jax.random.normal(k_x2, (B2, IN_FEATURES), jnp.float32))
    out2 = jax.block_until_ready(dirichlet_extractor(latent2, weight, bias, tb=128))
    assert out2.shape == (B2, OUT_FEATURES)
    assert jnp.allclose(out2, _reference(latent2, weight, bias), atol=1e-5, rtol=1e-5)

    print("KERNEL_OK")
</pallas_src>

<mosaic_0001>
module attributes {stable_mosaic.version = 11 : i64} {
  func.func @_dirichlet_extractor_kernel(%arg0: i32, %arg1: memref<8x128xf32, #tpu.memory_space<vmem>>, %arg2: memref<128x32xf32, #tpu.memory_space<vmem>>, %arg3: memref<1x32xf32, #tpu.memory_space<vmem>>, %arg4: memref<8x32xf32, #tpu.memory_space<vmem>>) attributes {dimension_semantics = [#tpu.dimension_semantics<parallel>], iteration_bounds = array<i64: 2>, scalar_prefetch = 0 : i64, scratch_operands = 0 : i64, tpu.core_type = #tpu.core_type<tc>, window_params = [{transform_indices = @transform_0, window_bounds = array<i64: 8, 128>}, {pipeline_mode = #tpu.pipeline_mode<synchronous>, transform_indices = @transform_1, window_bounds = array<i64: 128, 32>}, {pipeline_mode = #tpu.pipeline_mode<synchronous>, transform_indices = @transform_2, window_bounds = array<i64: 1, 32>}, {transform_indices = @transform_3, window_bounds = array<i64: 8, 32>}]} {
    %c0 = arith.constant 0 : index
    %c0_0 = arith.constant 0 : index
    %0 = vector.load %arg1[%c0, %c0_0] : memref<8x128xf32, #tpu.memory_space<vmem>>, vector<8x128xf32>
    %c0_1 = arith.constant 0 : index
    %c0_2 = arith.constant 0 : index
    %1 = vector.load %arg2[%c0_1, %c0_2] : memref<128x32xf32, #tpu.memory_space<vmem>>, vector<128x32xf32>
    %cst = arith.constant dense<0.000000e+00> : vector<8x32xf32>
    %2 = tpu.matmul %0, %1, %cst {dimension_numbers = #tpu.dot_dimension_numbers<[1], [0], [0], [1], [0, 0, 1, 1], [], []>} : vector<8x128xf32>, vector<128x32xf32>, vector<8x32xf32> -> vector<8x32xf32>
    %c0_3 = arith.constant 0 : index
    %c0_4 = arith.constant 0 : index
    %3 = vector.load %arg3[%c0_3, %c0_4] : memref<1x32xf32, #tpu.memory_space<vmem>>, vector<1x32xf32>
    %4 = vector.broadcast %3 : vector<1x32xf32> to vector<8x32xf32>
    %5 = arith.addf %2, %4 : vector<8x32xf32>
    %cst_5 = arith.constant 0.000000e+00 : f32
    %6 = vector.broadcast %cst_5 : f32 to vector<8x32xf32>
    %7 = arith.maximumf %5, %6 : vector<8x32xf32>
    %8 = math.absf %5 : vector<8x32xf32>
    %cst_6 = arith.constant 0.000000e+00 : f32
    %9 = vector.broadcast %cst_6 : f32 to vector<8x32xf32>
    %10 = arith.subf %9, %8 : vector<8x32xf32>
    %11 = math.exp %10 : vector<8x32xf32>
    %12 = math.log1p %11 : vector<8x32xf32>
    %13 = arith.addf %7, %12 : vector<8x32xf32>
    %c0_7 = arith.constant 0 : index
    %c0_8 = arith.constant 0 : index
    %14 = vector.load %arg4[%c0_7, %c0_8] : memref<8x32xf32, #tpu.memory_space<vmem>>, vector<8x32xf32>
    tpu.vector_store %arg4[%c0_7, %c0_8], %13 {strides = array<i32>} : memref<8x32xf32, #tpu.memory_space<vmem>>, vector<8x32xf32>,
    return
  }
  func.func @transform_0(%arg0: i32) -> (i32, i32) {
    %c0_i32 = arith.constant 0 : i32
    %c0_i32_0 = arith.constant 0 : i32
    return %arg0, %c0_i32 : i32, i32
  }
  func.func @transform_1(%arg0: i32) -> (i32, i32) {
    %c0_i32 = arith.constant 0 : i32
    %c0_i32_0 = arith.constant 0 : i32
    %c0_i32_1 = arith.constant 0 : i32
    return %c0_i32, %c0_i32_0 : i32, i32
  }
  func.func @transform_2(%arg0: i32) -> (i32, i32) {
    %c0_i32 = arith.constant 0 : i32
    %c0_i32_0 = arith.constant 0 : i32
    %c0_i32_1 = arith.constant 0 : i32
    return %c0_i32, %c0_i32_0 : i32, i32
  }
  func.func @transform_3(%arg0: i32) -> (i32, i32) {
    %c0_i32 = arith.constant 0 : i32
    %c0_i32_0 = arith.constant 0 : i32
    return %arg0, %c0_i32 : i32, i32
  }
}

</mosaic_0001>

<bundles_post_ra>
// kernel: tile.8
= control target key start
LH: loop header
LB: loop body
LE: loop exit
PB: predicated region body
PF: predicated region fallthrough
CT: control target
= control target key end

     0   :  { %s28_s0 = inlined_call_operand.vmem [shape: f32[2], index: 0, kind: input, shape index: {}]   ;;  %s29_s1 = inlined_call_operand.vmem [shape: f32[16,2], index: 1, kind: output, shape index: {}]  }
   0x1   :  { %v4_v0 = vld [vmem:[%s28_s0] ss:$0 sm:$0xff] }
   0x2   :  { %5 = vst [vmem:[%s29_s1] sm:$0xff] %v4_v0  ;;  %8 = vst [vmem:[%s29_s1 + $0x8] sm:$0xff] %v4_v0 }

// kernel: tile.9
= control target key start
LH: loop header
LB: loop body
LE: loop exit
PB: predicated region body
PF: predicated region fallthrough
CT: control target
= control target key end

     0   :  { %s131_s10 = smov 30   ;;  %s132_s11 = smov 26   ;;  %vm3_vm0 = vcmask 15360   ;;  %vm9_vm1 = vcmask 261360   ;;  %vm15_vm2 = vcmask 244960   ;;  %vm21_vm3 = vcmask 228560   ;;  %s207_s0 = inlined_call_operand.vmem [shape: f32[16,2], index: 0, kind: input, shape index: {}]   ;;  %s208_s1 = inlined_call_operand.vmem [shape: f32[1,32], index: 1, kind: output, shape index: {}]  }
   0x1   :  { %v101_v0 = vld [vmem:[%s207_s0 + $0xf] sm:$0x1]   ;;  %v103_v1 = vld [vmem:[%s207_s0 + $0xd] sm:$0x1]   ;;  %v102_v2 = vld [vmem:[%s207_s0 + $0xe] sm:$0x1]  }
   0x2   :  { %7 = vrot.lane.b32.xlu0 %v101_v0, %s131_s10  ;;  %19 = vrot.lane.b32.xlu1 %v103_v1, %s132_s11  ;;  %v104_v3 = vld [vmem:[%s207_s0 + $0xc] sm:$0x1]   ;;  %s133_s16 = smov 28   ;;  %s134_s17 = smov 24   ;;  %v105_v4 = vld [vmem:[%s207_s0 + $0xb] sm:$0x1]  }
   0x3   :  { %v106_v5 = vld [vmem:[%s207_s0 + $0xa] sm:$0x1]   ;;  %v2_v6 = vld [vmem:[%s207_s0] sm:$0x1]   ;;  %s135_s24 = smov 22   ;;  %s136_s25 = smov 20  }
   0x4   :  { %4 = vst.msk [vmem:[#allocation0] sm:$0x1] %vm3_vm0, %v2_v6   ;;  %v107_v7 = vld [vmem:[%s207_s0 + $0x9] sm:$0x1]   ;;  %v108_v8 = vld [vmem:[%s207_s0 + $0x8] sm:$0x1]  }
   0x5   :  { %s137_s30 = smov 18   ;;  %s138_s2 = smov 16   ;;  %v109_v9 = vld [vmem:[%s207_s0 + $0x7] sm:$0x1]   ;;  %v110_v10 = vld [vmem:[%s207_s0 + $0x6] sm:$0x1]  }
   0x6   :  { %13 = vrot.lane.b32.xlu0 %v102_v2, %s133_s16  ;;  %25 = vrot.lane.b32.xlu1 %v104_v3, %s134_s17  ;;  %s139_s7 = smov 14   ;;  %s140_s8 = smov 12   ;;  %v111_v11 = vld [vmem:[%s207_s0 + $0x5] sm:$0x1]   ;;  %v112_v12 = vld [vmem:[%s207_s0 + $0x4] sm:$0x1]  }
   0x7   :  { %s141_s13 = smov 10   ;;  %s142_s14 = smov 8   ;;  %v113_v13 = vld [vmem:[%s207_s0 + $0x3] sm:$0x1]   ;;  %v114_v14 = vld [vmem:[%s207_s0 + $0x2] sm:$0x1]  }
   0x8   :  { %s143_s19 = smov 6   ;;  %s144_s20 = smov 4   ;;  %v115_v15 = vld [vmem:[%s207_s0 + $0x1] sm:$0x1]   ;;  %vm27_vm4 = vcmask 212160   ;;  %vm33_vm5 = vcmask 195760  }
   0x9   :  { %s145_s0 = smov 2   ;;  %vm39_vm6 = vcmask 179360   ;;  %vm45_vm7 = vcmask 162960   ;;  %vm51_vm8 = vcmask 146560   ;;  %vm57_vm9 = vcmask 130160  }
   0xa   :  { %31 = vrot.lane.b32.xlu0 %v105_v4, %s135_s24  ;;  %37 = vrot.lane.b32.xlu1 %v106_v5, %s136_s25  ;;  %vm63_vm10 = vcmask 113760   ;;  %vm69_vm11 = vcmask 97360   ;;  %vm75_vm12 = vcmask 80960   ;;  %vm81_vm13 = vcmask 64560  }
   0xb   :  { %vm87_vm14 = vcmask 48160   ;;  %vm93_vm15 = vcmask 31760  }
   0xe   :  { %43 = vrot.lane.b32.xlu0 %v107_v7, %s137_s30  ;;  %49 = vrot.lane.b32.xlu1 %v108_v8, %s138_s2 }
  0x12   :  { %55 = vrot.lane.b32.xlu0 %v109_v9, %s139_s7  ;;  %61 = vrot.lane.b32.xlu1 %v110_v10, %s140_s8 }
  0x16   :  { %67 = vrot.lane.b32.xlu0 %v111_v11, %s141_s13  ;;  %73 = vrot.lane.b32.xlu1 %v112_v12, %s142_s14 }
  0x1a   :  { %79 = vrot.lane.b32.xlu0 %v113_v13, %s143_s19  ;;  %85 = vrot.lane.b32.xlu1 %v114_v14, %s144_s20 }
  0x1e   :  { %91 = vrot.lane.b32.xlu0 %v115_v15, %s145_s0 }
  0x74   :  { %v8_v16 = vpop.permute.xlu0 %7   ;;  %v20_v17 = vpop.permute.xlu1 %19  }
  0x75   :  { %10 = vst.msk [vmem:[#allocation0] sm:$0x1] %vm9_vm1, %v8_v16  }
  0x78   :  { %v14_v18 = vpop.permute.xlu0 %13   ;;  %v26_v19 = vpop.permute.xlu1 %25  }
  0x79   :  { %16 = vst.msk [vmem:[#allocation0] sm:$0x1] %vm15_vm2, %v14_v18  }
  0x7a   :  { %22 = vst.msk [vmem:[#allocation0] sm:$0x1] %vm21_vm3, %v20_v17  }
  0x7b   :  { %28 = vst.msk [vmem:[#allocation0] sm:$0x1] %vm27_vm4, %v26_v19  }
  0x7c   :  { %v32_v20 = vpop.permute.xlu0 %31   ;;  %v38_v21 = vpop.permute.xlu1 %37  }
  0x7d   :  { %34 = vst.msk [vmem:[#allocation0] sm:$0x1] %vm33_vm5, %v32_v20  }
  0x7e   :  { %40 = vst.msk [vmem:[#allocation0] sm:$0x1] %vm39_vm6, %v38_v21  }
  0x80   :  { %v44_v22 = vpop.permute.xlu0 %43   ;;  %v50_v23 = vpop.permute.xlu1 %49  }
  0x81   :  { %46 = vst.msk [vmem:[#allocation0] sm:$0x1] %vm45_vm7, %v44_v22  }
  0x82   :  { %52 = vst.msk [vmem:[#allocation0] sm:$0x1] %vm51_vm8, %v50_v23  }
  0x84   :  { %v56_v24 = vpop.permute.xlu0 %55   ;;  %v62_v25 = vpop.permute.xlu1 %61  }
  0x85   :  { %58 = vst.msk [vmem:[#allocation0] sm:$0x1] %vm57_vm9, %v56_v24  }
  0x86   :  { %64 = vst.msk [vmem:[#allocation0] sm:$0x1] %vm63_vm10, %v62_v25  }
  0x88   :  { %v68_v26 = vpop.permute.xlu0 %67   ;;  %v74_v27 = vpop.permute.xlu1 %73  }
  0x89   :  { %70 = vst.msk [vmem:[#allocation0] sm:$0x1] %vm69_vm11, %v68_v26  }
  0x8a   :  { %76 = vst.msk [vmem:[#allocation0] sm:$0x1] %vm75_vm12, %v74_v27  }
  0x8c   :  { %v80_v28 = vpop.permute.xlu0 %79   ;;  %v86_v29 = vpop.permute.xlu1 %85  }
  0x8d   :  { %82 = vst.msk [vmem:[#allocation0] sm:$0x1] %vm81_vm13, %v80_v28  }
  0x8e   :  { %88 = vst.msk [vmem:[#allocation0] sm:$0x1] %vm87_vm14, %v86_v29  }
  0x90   :  { %v92_v30 = vpop.permute.xlu0 %91  }
  0x91   :  { %94 = vst.msk [vmem:[#allocation0] sm:$0x1] %vm93_vm15, %v92_v30  }
  0x98   :  { %v98_v31 = vld [vmem:[#allocation0] sm:$0x1] }
  0x99   :  { %100 = vst [vmem:[%s208_s1] sm:$0x1] %v98_v31 }

// kernel: dirichlet_extractor.1
= control target key start
LH: loop header
LB: loop body
LE: loop exit
PB: predicated region body
PF: predicated region fallthrough
CT: control target
= control target key end

     0   :  { %s462_s12 = smov 0   ;;  %s537_s0 = inlined_call_operand.vmem [shape: f32[16,128], index: 0, kind: input, shape index: {}]   ;;  %s538_s1 = inlined_call_operand.vmem [shape: f32[128,32], index: 1, kind: input, shape index: {}]   ;;  %s539_s2 = inlined_call_operand.vmem [shape: f32[1,32], index: 2, kind: input, shape index: {}]   ;;  %s540_s3 = inlined_call_operand.vmem [shape: f32[16,32], index: 3, kind: output, shape index: {}]  }
   0x1 LB: > { %s330_s13 = sadd.s32 4294967295, %s437_s12   ;;  %p334_p0 = scmp.ge.s32.totalorder %s437_s12, 1  ;;  %s437_s12 = sphi %s462_s12, %s13_s12  }
   0x2   : > { %p136_p1 = scmp.lt.s32.totalorder %s437_s12, 3 }
   0x4   : > { %p137_p2 = pnand %p334_p0, %p136_p1 }
   0x5   : > { %v167_v0 = vld [vmem:[%s538_s1] sm:$0xff] (!%p137_p2)  ;;  %v168_v1 = vld [vmem:[%s538_s1 + $0x8] sm:$0xff] (!%p137_p2)  ;;  %v169_v2 = vld [vmem:[%s538_s1 + $0x10] sm:$0xff] (!%p137_p2)  ;;  %v439_v3 = vmov (!%p137_p2), 0.0|0.0   ;;  %vm440_vm0 = vmmov (!%p137_p2), 0   ;;  %v441_v6 = vmov (!%p137_p2), 0.0  }
   0x6   : > { %140 = sbr.rel (%p137_p2) target bundleno = 289 (0x121), region = 32  ;;  %392 = vmatprep.subr.bf16.mxu0 (!%p137_p2), %v439_v3  ;;  %v393_v4 = vpack.c.bf16 (!%p137_p2), %v168_v1, %v167_v0  ;;  %v170_v5 = vld [vmem:[%s538_s1 + $0x18] sm:$0xff] (!%p137_p2)  ;;  %389 = vmatprep.mubr.msk.f32.mxu0 (!%p137_p2), %vm440_vm0, %v441_v6  ;;  %v171_v8 = vld [vmem:[%s538_s1 + $0x20] sm:$0xff] (!%p137_p2)  ;;  %v172_v9 = vld [vmem:[%s538_s1 + $0x28] sm:$0xff] (!%p137_p2)  ;;  %p158_p3 = scmp.lt.s32.totalorder (!%p137_p2), %s330_s13, 1  ;;  %vm275_vm2 = vcmask (!%p137_p2), 261120  }
   0x7   : > { %v396_v7 = vpack.c.bf16 (!%p137_p2), %v170_v5, %v169_v2  ;;  %v399_v10 = vpack.c.bf16 (!%p137_p2), %v172_v9, %v171_v8  ;;  %v173_v11 = vld [vmem:[%s538_s1 + $0x30] sm:$0xff] (!%p137_p2)  ;;  %v174_v12 = vld [vmem:[%s538_s1 + $0x38] sm:$0xff] (!%p137_p2)  ;;  %v175_v14 = vld [vmem:[%s538_s1 + $0x40] sm:$0xff] (!%p137_p2) }
   0x8   : > { %394 = vmatpush3.bf16.msra.mxu0 (!%p137_p2), %v393_v4  ;;  %v402_v13 = vpack.c.bf16 (!%p137_p2), %v174_v12, %v173_v11  ;;  %v176_v15 = vld [vmem:[%s538_s1 + $0x48] sm:$0xff] (!%p137_p2)  ;;  %v177_v17 = vld [vmem:[%s538_s1 + $0x50] sm:$0xff] (!%p137_p2)  ;;  %v178_v18 = vld [vmem:[%s538_s1 + $0x58] sm:$0xff] (!%p137_p2) }
   0x9   : > { %395 = vmatprep.subr.bf16.mxu0 (!%p137_p2), %v439_v3  ;;  %v405_v16 = vpack.c.bf16 (!%p137_p2), %v176_v15, %v175_v14  ;;  %v408_v19 = vpack.c.bf16 (!%p137_p2), %v178_v18, %v177_v17  ;;  %v179_v20 = vld [vmem:[%s538_s1 + $0x60] sm:$0xff] (!%p137_p2)  ;;  %v180_v21 = vld [vmem:[%s538_s1 + $0x68] sm:$0xff] (!%p137_p2)  ;;  %v181_v23 = vld [vmem:[%s538_s1 + $0x70] sm:$0xff] (!%p137_p2) }
   0xa   : > { %v411_v22 = vpack.c.bf16 (!%p137_p2), %v180_v21, %v179_v20  ;;  %v182_v24 = vld [vmem:[%s538_s1 + $0x78] sm:$0xff] (!%p137_p2)  ;;  %v337_v27 = vld [vmem:[%s539_s2] ss:$0 sm:$0xff] (!%p137_p2) }
   0xb   : > { %v414_v25 = vpack.c.bf16 (!%p137_p2), %v182_v24, %v181_v23 }
   0xc   : > { %397 = vmatpush3.bf16.msra.mxu0 (!%p137_p2), %v396_v7 }
   0xd   : > { %398 = vmatprep.subr.bf16.mxu0 %v439_v3  ;;  %s542_s13 = smov (!%p158_p3, %s330_s13), 1 }
   0xe   : > { %s335_s21 = sshll.u32 %s542_s13, 3 }
   0xf   : > { %s161_s24 = scalar_lea.vmem %s537_s0, %s335_s21  ;;  %s165_s28 = scalar_lea.vmem %s540_s3, %s335_s21 }
  0x10   : > { %400 = vmatpush3.bf16.msra.mxu0 %v399_v10  ;;  %v166_v26 = vld [vmem:[%s161_s24] sm:$0xff] }
  0x11   : > { %401 = vmatprep.subr.bf16.mxu0 %v439_v3 }
  0x14   : > { %403 = vmatpush3.bf16.msra.mxu0 %v402_v13 }
  0x15   : > { %404 = vmatprep.subr.bf16.mxu0 %v439_v3 }
  0x18   : > { %406 = vmatpush3.bf16.msra.mxu0 %v405_v16 }
  0x19   : > { %407 = vmatprep.subr.bf16.mxu0 %v439_v3 }
  0x1c   : > { %409 = vmatpush3.bf16.msra.mxu0 %v408_v19 }
  0x1d   : > { %410 = vmatprep.subr.bf16.mxu0 %v439_v3 }
  0x20   : > { %412 = vmatpush3.bf16.msra.mxu0 %v411_v22 }
  0x21   : > { %413 = vmatprep.subr.bf16.mxu0 %v439_v3 }
  0x24   : > { %415 = vmatpush3.bf16.msra.mxu0 %v414_v25 }
  0x27   : > { %390 = vmatmul.mubr.f32.vlgmr.msra.gmra.mrb[0].mxu0 %v166_v26 }
  0xfa   : > { %v256_v28 = vpop.f32.mrb[0].mxu0 }
  0xfb   : > { %v257_v29 = vadd.f32 %v337_v27, %v256_v28  ;;  %v391_v30 = vpop.f32.mrb[1].mxu0 }
  0xfd   : > { %v261_v31 = vand.u32 2147483647, %v257_v29  ;;  %v260_v42 = vmax.f32 %v257_v29, 0.0 }
  0xff   : > { %v262_v32 = vsub.f32 0.0, %v261_v31 }
 0x101   : > { %v263_v33 = vmul.f32 1.442695, %v262_v32 }
 0x103   : > { %427 = vpow2.f32 %v263_v33 }
 0x10d   : > { %v428_v34 = vpop.eup %427 }
 0x10e   : > { %v265_v35 = vadd.f32 1.0, %v428_v34  ;;  %v268_v36 = vmul.f32 -0.5, %v428_v34  ;;  %v271_v38 = vand.u32 2147483647, %v428_v34 }
 0x110   : > { %429 = vlog2.f32 %v265_v35  ;;  %v269_v37 = vadd.f32 1.0, %v268_v36  ;;  %vm272_vm1 = vcmp.lt.f32.partialorder %v271_v38, 0.0004427343 }
 0x112   : > { %v270_v41 = vmul.f32 %v428_v34, %v269_v37 }
 0x11a   : > { %v430_v39 = vpop.eup %429 }
 0x11b   : > { %v267_v40 = vmul.f32 0.6931472, %v430_v39 }
 0x11d   : > { %v273_v43 = vsel %vm272_vm1, %v270_v41, %v267_v40 }
 0x11e   : > { %v274_v44 = vadd.f32 %v273_v43, %v260_v42 }
 0x120   : > { %276 = vst.msk [vmem:[%s165_s28] sm:$0xff] %vm275_vm2, %v274_v44 }
 0x121 PF: > { %s13_s12 = sadd.s32 1, %s437_s12  }
 0x122   : > { %p10_p4 = scmp.ge.s32.totalorder %s13_s12, 4  }
 0x124   :  { %12 = sbr.rel (!%p10_p4) target bundleno = 1 (0x1), region = 62 }

</bundles_post_ra>
